<compile_context>
chip_gen: v5e
topology: v5e:2x2
jax: 0.10.0
libtpu: 0.0.40
codegen_flags: <defaults>
</compile_context>

<pallas_src>
import jax
import jax.numpy as jnp
from jax.experimental import pallas as pl
from jax.experimental.pallas import tpu as pltpu

_LANES = 1024                      # last-dim width: large multiple of 128 -> wide unmasked vst
_MAX_BLOCK_ROWS = 2048             # 2048 x 1024 x 4B = 8 MiB per f32 tile
_SMALL_N = 1 << 18                 # below ~256K elems, pallas_call overhead dominates
_VMEM_LIMIT = 48 * 1024 * 1024     # covers 4 x 8 MiB double-buffered tiles; <= v7x's 64 MiB


def _round_up(a, m):
    return ((a + m - 1) // m) * m


def _scalar_affine_kernel(wb_ref, x_ref, o_ref):
    # wb_ref: SMEM (2,) f32 -> [weight, bias]; x_ref / o_ref: VMEM tiles.
    w = wb_ref[0]
    b = wb_ref[1]
    o_ref[...] = (x_ref[...].astype(jnp.float32) * w + b).astype(o_ref.dtype)


def scalar_layer(x, weight, bias, *, min_pallas_elements=_SMALL_N):
    """PyTorch nn.Linear(1, 1): y = w * x + b with scalar w, b.

    x:      (..., 1) float
    weight: (1, 1)   float
    bias:   (1,)     float
    """
    assert x.shape[-1] == 1, "ScalarLayer expects a trailing singleton feature dim"
    orig_shape = x.shape
    n = x.size

    w = weight.reshape(()).astype(jnp.float32)
    b = bias.reshape(()).astype(jnp.float32)

    # Small inputs: a fused XLA elementwise op beats kernel-launch overhead.
    if n < min_pallas_elements:
        return (x.astype(jnp.float32) * w + b).astype(x.dtype)

    x_flat = x.reshape(n)

    # Lane-dense slab (rows, 1024). Pad only to a lane multiple (< 1024 extra
    # elements), never to a block multiple — partial final grid block is fine
    # for an elementwise op.
    n_padded = _round_up(n, _LANES)
    if n_padded != n:
        # TODO(synk): ragged sizes still pay one pad copy + one slice copy; a
        # prefix(Pallas)/tail(JAX) split could remove them at the cost of a concat.
        x_flat = jnp.pad(x_flat, (0, n_padded - n))
    rows = n_padded // _LANES
    x2 = x_flat.reshape(rows, _LANES)

    # Block height: multiple of 32 sublanes (f32/bf16/int8-safe), >= 2 grid
    # steps whenever rows > 32, capped at 8 MiB f32 tiles for v7x VMEM safety.
    if rows <= 32:
        block_rows = rows  # single block equal to the full array dims (legal for any dtype)
    else:
        block_rows = min(_MAX_BLOCK_ROWS, _round_up(pl.cdiv(rows, 2), 32))
    grid = (pl.cdiv(rows, block_rows),)

    out = pl.pallas_call(
        _scalar_affine_kernel,
        out_shape=jax.ShapeDtypeStruct((rows, _LANES), x.dtype),
        grid=grid,
        in_specs=[
            pl.BlockSpec(memory_space=pltpu.MemorySpace.SMEM),       # [w, b] scalars
            pl.BlockSpec((block_rows, _LANES), lambda i: (i, 0)),    # x tile
        ],
        out_specs=pl.BlockSpec((block_rows, _LANES), lambda i: (i, 0)),
        compiler_params=pltpu.CompilerParams(
            dimension_semantics=("parallel",),   # shards grid across v7x's 2 TCs
            vmem_limit_bytes=_VMEM_LIMIT,
        ),
    )(jnp.stack([w, b]), x2)

    out_flat = out.reshape(n_padded)
    if n_padded != n:
        out_flat = out_flat[:n]
    return out_flat.reshape(orig_shape)


if __name__ == "__main__":
    key = jax.random.PRNGKey(0)
    kx, kw, kb, kr = jax.random.split(key, 4)

    # (..., 1) input for nn.Linear(1, 1): small "image-like" batch with a
    # trailing singleton feature dim. n = 2048 (lane-aligned, no padding path).
    x = jax.random.normal(kx, (2, 4, 16, 16, 1), dtype=jnp.float32)

    # Deterministic parameter init (nn.Linear(1,1)-style uniform).
    weight = jax.random.uniform(kw, (1, 1), jnp.float32, minval=-1.0, maxval=1.0)
    bias = jax.random.uniform(kb, (1,), jnp.float32, minval=-1.0, maxval=1.0)

    ref = x * weight[0, 0] + bias[0]

    # Force the Pallas path even at this small demo size.
    y = scalar_layer(x, weight, bias, min_pallas_elements=1)
    jax.block_until_ready(y)
    assert y.shape == x.shape
    assert jnp.allclose(y, ref, atol=1e-6), "pallas path mismatch vs reference"

    # Ragged size (n not a multiple of 1024) exercises the lane-pad path.
    xr = jax.random.normal(kr, (3, 5, 7, 1), dtype=jnp.float32)
    yr = scalar_layer(xr, weight, bias, min_pallas_elements=1)
    jax.block_until_ready(yr)
    assert yr.shape == xr.shape
    assert jnp.allclose(yr, xr * weight[0, 0] + bias[0], atol=1e-6), "ragged path mismatch"

    # Default small-input fallback path sanity check.
    y_small = scalar_layer(x, weight, bias)
    jax.block_until_ready(y_small)
    assert jnp.allclose(y_small, ref, atol=1e-6), "fallback path mismatch vs reference"

    print("KERNEL_OK")
</pallas_src>

<mosaic_0001>
module attributes {stable_mosaic.version = 11 : i64} {
  func.func @_scalar_affine_kernel(%arg0: i32, %arg1: memref<2xf32, #tpu.memory_space<smem>>, %arg2: memref<2x1024xf32, #tpu.memory_space<vmem>>, %arg3: memref<2x1024xf32, #tpu.memory_space<vmem>>) attributes {dimension_semantics = [#tpu.dimension_semantics<parallel>], iteration_bounds = array<i64: 1>, scalar_prefetch = 0 : i64, scratch_operands = 0 : i64, tpu.core_type = #tpu.core_type<tc>, window_params = [{transform_indices = @transform_0, window_bounds = array<i64: 2>}, {transform_indices = @transform_1, window_bounds = array<i64: 2, 1024>}, {transform_indices = @transform_2, window_bounds = array<i64: 2, 1024>}]} {
    %c0 = arith.constant 0 : index
    %0 = memref.load %arg1[%c0] : memref<2xf32, #tpu.memory_space<smem>>
    %c1 = arith.constant 1 : index
    %1 = memref.load %arg1[%c1] : memref<2xf32, #tpu.memory_space<smem>>
    %c0_0 = arith.constant 0 : index
    %c0_1 = arith.constant 0 : index
    %2 = vector.load %arg2[%c0_0, %c0_1] : memref<2x1024xf32, #tpu.memory_space<vmem>>, vector<2x1024xf32>
    %3 = vector.broadcast %0 : f32 to vector<2x1024xf32>
    %4 = arith.mulf %2, %3 : vector<2x1024xf32>
    %5 = vector.broadcast %1 : f32 to vector<2x1024xf32>
    %6 = arith.addf %4, %5 : vector<2x1024xf32>
    %c0_2 = arith.constant 0 : index
    %c0_3 = arith.constant 0 : index
    %7 = vector.load %arg3[%c0_2, %c0_3] : memref<2x1024xf32, #tpu.memory_space<vmem>>, vector<2x1024xf32>
    tpu.vector_store %arg3[%c0_2, %c0_3], %6 {strides = array<i32>} : memref<2x1024xf32, #tpu.memory_space<vmem>>, vector<2x1024xf32>,
    return
  }
  func.func @transform_0(%arg0: i32) -> i32 {
    %c0_i32 = arith.constant 0 : i32
    %c0_i32_0 = arith.constant 0 : i32
    return %c0_i32 : i32
  }
  func.func @transform_1(%arg0: i32) -> (i32, i32) {
    %c0_i32 = arith.constant 0 : i32
    %c0_i32_0 = arith.constant 0 : i32
    return %arg0, %c0_i32 : i32, i32
  }
  func.func @transform_2(%arg0: i32) -> (i32, i32) {
    %c0_i32 = arith.constant 0 : i32
    %c0_i32_0 = arith.constant 0 : i32
    return %arg0, %c0_i32 : i32, i32
  }
}

</mosaic_0001>

<bundles_post_ra>
// kernel: tpu_custom_call.1
= control target key start
LH: loop header
LB: loop body
LE: loop exit
PB: predicated region body
PF: predicated region fallthrough
CT: control target
= control target key end

     0   :  { %7 = vsyncpa [#allocation5], 0  ;;  %s166_s0 = inlined_call_operand.hbm [shape: f32[2], index: 0, kind: input, shape index: {}]   ;;  %s167_s1 = inlined_call_operand.hbm [shape: f32[2,1024], index: 1, kind: input, shape index: {}]   ;;  %s168_s2 = inlined_call_operand.hbm [shape: f32[2,1024], index: 2, kind: output, shape index: {}]  }
   0x1   :  { %8 = vsyncpa [#allocation3], 0 }
   0x2   :  { %9 = vsyncpa [#allocation4], 0  ;;  %s15_s11 = sshll.u32 %s166_s0, 4  ;;  %s24_s14 = sshll.u32 %s167_s1, 4  ;;  %s16_s11 = int_to_ptr.hbm [resolvable:$true] %s15_s11  ;;  %s25_s14 = int_to_ptr.hbm [resolvable:$true] %s24_s14 }
   0x3   :  { %s139_s15 = smov [#allocation2]   ;;  %s140_s16 = smov [#allocation6]  }
   0x4   :  { %18 = dma.hbm_to_smem %s16_s11, 16, %s139_s15, [#allocation5]  }
   0x5   :  { %s26_s17 = sshll.u32 %s140_s16, 4  ;;  %s27_s17 = int_to_ptr.vmem [resolvable:$true] %s26_s17 }
   0x6   :  { %29 = dma.hbm_to_vmem [thread:$0]  %s25_s14, 256, %s27_s17, [#allocation3]  }
   0x7   :  { %133 = dma.done.wait [#allocation5], 16  }
   0x8   :  { %134 = vsyncadd [#allocation5], 4294967280 }
   0x9   :  { %135 = dma.done.wait [#allocation3], 256  }
   0xa   :  { %136 = vsyncadd [#allocation3], 4294967040 }
   0xb   :  { %38 = sfence }
   0xc   :  { %s39_s18 = sld [smem:[#allocation2]]  ;;  %v41_v0 = vld [vmem:[#allocation6] sm:$0xff]  ;;  %v42_v1 = vld [vmem:[#allocation6 + $0x8] sm:$0xff]  ;;  %s141_s0 = smov [#allocation7]  }
   0xd   :  { %s69_s19 = sld [smem:[#allocation2 + $0x1]]  ;;  %s56_s1 = sshll.u32 %s141_s0, 4  ;;  %s57_s1 = int_to_ptr.vmem [resolvable:$true] %s56_s1 }
   0xe   :  { %s58_s22 = sshll.u32 %s168_s2, 4  ;;  %s59_s22 = int_to_ptr.hbm [resolvable:$true] %s58_s22 }
  0x12   :  { %v43_v2 = vstv %s39_s18 }
  0x13   :  { %v44_v3 = vmul.f32 %v43_v2, %v41_v0  ;;  %v46_v4 = vstv %s69_s19  ;;  %v45_v5 = vmul.f32 %v43_v2, %v42_v1 }
  0x15   :  { %v47_v6 = vadd.f32 %v46_v4, %v44_v3  ;;  %v48_v7 = vadd.f32 %v46_v4, %v45_v5 }
  0x17   :  { %49 = vst [vmem:[#allocation7] sm:$0xff] %v47_v6 }
  0x18   :  { %50 = vst [vmem:[#allocation7 + $0x8] sm:$0xff] %v48_v7 }
  0x19   :  { %61 = dma.vmem_to_hbm [thread:$0]  %s57_s1, 256, %s59_s22, [#allocation4]  }
  0x1a   :  { %137 = dma.done.wait [#allocation4], 256  }
  0x1b   :  { %138 = vsyncadd [#allocation4], 4294967040 }
  0x1c   :  { %66 = vsyncpa [#allocation3], 1 }
  0x1d   :  { %67 = vsyncpa [#allocation4], 1 }
  0x1e   :  { %68 = vsyncpa [#allocation5], 1 }

</bundles_post_ra>
